<compile_context>
chip_gen: v6e
topology: v6e:2x2x1
jax: 0.10.0
libtpu: 0.0.40
codegen_flags: <defaults>
</compile_context>

<pallas_src>
from itertools import permutations

import numpy as np
import jax
import jax.numpy as jnp
from jax.experimental import pallas as pl
from jax.experimental.pallas import tpu as pltpu

try:  # fast C LAPJV solver if present; numpy fallback below otherwise
    from scipy.optimize import linear_sum_assignment as _scipy_lsa
except Exception:  # pragma: no cover - scipy optional
    _scipy_lsa = None


def _round_up(x, m):
    return ((x + m - 1) // m) * m


def _largest_divisor_tile(total, base, cap):
    """Largest multiple of `base` that divides `total` (a multiple of `base`)
    and is <= cap.  Keeps output padding at exactly the (8,128) rounding while
    amortizing per-grid-step overhead with the biggest tile that fits."""
    best = base
    d = base
    limit = min(total, cap)
    while d <= limit:
        if total % d == 0:
            best = d
        d += base
    return best


# ----------------------------- Pallas kernel -------------------------------

def _cost_kernel(tgt_ref, predT_ref, cost_ref):
    # tgt_ref: (1, TM, 2)  predT_ref: (1, 2, TN)  cost_ref: (1, TM, TN)
    gt = tgt_ref[0]            # (TM, 2)  ground-truth points (rows of cost)
    prT = predT_ref[0]         # (2, TN)  predicted points    (cols of cost)
    gx = gt[:, 0:1]            # (TM, 1)
    gy = gt[:, 1:2]            # (TM, 1)
    px = prT[0:1, :]           # (1, TN)
    py = prT[1:2, :]           # (1, TN)
    # cost[i, j] = |gt_x[i] - pr_x[j]| + |gt_y[i] - pr_y[j]|   (p=1 cdist)
    cost_ref[0] = jnp.abs(gx - px) + jnp.abs(gy - py)


# ------------------------------ Pallas wrapper ------------------------------

@jax.jit
def pairwise_l1_cost(pred, target):
    """cost[b, i, j] = sum_k |target[b, i, k] - pred[b, j, k]|  -> (B, N, N) f32.

    Padding (rows to x8, cols to x128) is applied for lane-dense unmasked
    stores and sliced off on device before returning, so the host copy that
    feeds the Hungarian solve transfers exactly B*N*N*4 bytes.
    """
    B, N, _ = pred.shape
    Nr = _round_up(N, 8)            # sublane-padded rows (ground truth)
    Nc = _round_up(N, 128)          # lane-padded cols    (predictions)
    TM = _largest_divisor_tile(Nr, 8, 512)
    TN = _largest_divisor_tile(Nc, 128, 1024)
    # v7x has 2 TensorCores and shards "parallel" grid axes across them:
    # make sure the grid has at least 2 blocks when the problem allows it.
    if B * (Nr // TM) * (Nc // TN) < 2:
        if Nr > 8:
            TM = _largest_divisor_tile(Nr, 8, max(8, Nr // 2))
        elif Nc > 128:
            TN = _largest_divisor_tile(Nc, 128, max(128, Nc // 2))

    # Pad + transpose fused into the same jit as the kernel (no extra HBM pass).
    tgt = jnp.zeros((B, Nr, 2), jnp.float32).at[:, :N, :].set(
        target.astype(jnp.float32))
    predT = jnp.zeros((B, 2, Nc), jnp.float32).at[:, :, :N].set(
        jnp.transpose(pred.astype(jnp.float32), (0, 2, 1)))

    cost_pad = pl.pallas_call(
        _cost_kernel,
        out_shape=jax.ShapeDtypeStruct((B, Nr, Nc), jnp.float32),
        grid=(B, Nr // TM, Nc // TN),
        in_specs=[
            pl.BlockSpec((1, TM, 2), lambda b, i, j: (b, i, 0)),
            pl.BlockSpec((1, 2, TN), lambda b, i, j: (b, 0, j)),
        ],
        out_specs=pl.BlockSpec((1, TM, TN), lambda b, i, j: (b, i, j)),
        compiler_params=pltpu.CompilerParams(
            # no reduction axis -> all parallel (megacore sharding on v7x)
            dimension_semantics=("parallel", "parallel", "parallel"),
            vmem_limit_bytes=32 * 1024 * 1024,
        ),
    )(tgt, predT)
    # Slice padding off ON DEVICE: cuts D2H volume before the host solve.
    return cost_pad[:, :N, :N]


# --------------------- host-side Hungarian (assignment) --------------------
# TODO(synk): linear_sum_assignment (Hungarian) has no Pallas equivalent --
# it is a sequential combinatorial algorithm; PyTorch also runs it on CPU via
# `.detach().cpu().numpy()`.  scipy's C LAPJV is used when available, with a
# numpy-vectorized O(n^3) Jonker-Volgenant fallback.
def _linear_sum_assignment_np(cost):
    cost = np.asarray(cost, dtype=np.float64)
    n = cost.shape[0]
    INF = float("inf")
    u = np.zeros(n + 1)
    v = np.zeros(n + 1)
    p = np.zeros(n + 1, dtype=np.int64)     # p[j]: row (1-indexed) matched to col j
    way = np.zeros(n + 1, dtype=np.int64)
    for i in range(1, n + 1):
        p[0] = i
        j0 = 0
        minv = np.full(n + 1, INF)
        used = np.zeros(n + 1, dtype=bool)
        while True:
            used[j0] = True
            i0 = p[j0]
            # vectorized scan over unused columns j = 1..n
            free = ~used
            free[0] = False
            jidx = np.nonzero(free)[0]
            cur = cost[i0 - 1, jidx - 1] - u[i0] - v[jidx]
            upd = cur < minv[jidx]
            minv[jidx] = np.where(upd, cur, minv[jidx])
            way[jidx] = np.where(upd, j0, way[jidx])
            k = int(np.argmin(minv[jidx]))
            j1 = int(jidx[k])
            delta = minv[j1]
            u[p[used]] += delta
            v[used] -= delta
            minv[~used] -= delta
            j0 = j1
            if p[j0] == 0:
                break
        while True:
            j1 = way[j0]
            p[j0] = p[j1]
            j0 = j1
            if j0 == 0:
                break
    col_of_row = np.zeros(n, dtype=np.int64)
    for j in range(1, n + 1):
        col_of_row[p[j] - 1] = j - 1
    return np.arange(n), col_of_row


def _solve_assignment(cost_b):
    if _scipy_lsa is not None:
        r, c = _scipy_lsa(cost_b)
        return np.asarray(r), np.asarray(c)
    return _linear_sum_assignment_np(cost_b)


# ------------------------------ full forward --------------------------------

def hungarian_l1_loss(pred, target):
    """Equivalent of HungarianL1Loss.forward(pred, target); pred/target: [B, N, 2]."""
    B, N, _ = pred.shape
    # Pallas hot path: per-batch pairwise L1 cost, sliced on device to (B,N,N).
    cost = np.asarray(jax.device_get(pairwise_l1_cost(pred, target)))
    # Host: optimal assignment per batch + matched-cost sum.  Since
    #   cost[b, i, col[i]] = sum_k |pred[b, col[i], k] - target[b, i, k]|,
    # the loss equals sum of matched entries / (B * N * 2), i.e. the average
    # over batches of F.l1_loss(pred_sorted, target).  No second device pass.
    total = 0.0
    for b in range(B):
        r, c = _solve_assignment(cost[b])
        total += float(cost[b, r, c].sum(dtype=np.float64))
    return jnp.asarray(total / (B * N * 2), dtype=jnp.float32)


# ------------------------------ reference check -----------------------------

def _ref_loss(pred_np, tgt_np):
    B, N, _ = pred_np.shape
    perms = np.array(list(permutations(range(N))))
    total = 0.0
    for b in range(B):
        cost = np.abs(tgt_np[b][:, None, :] - pred_np[b][None, :, :]).sum(-1)
        sums = cost[np.arange(N)[None, :], perms].sum(axis=1)
        best_perm = perms[np.argmin(sums)]
        pred_sorted = pred_np[b][best_perm]
        total += np.abs(pred_sorted - tgt_np[b]).mean()
    return total / B


if __name__ == "__main__":
    key = jax.random.PRNGKey(0)
    k1, k2 = jax.random.split(key)
    B, N = 2, 8
    pred = jax.random.normal(k1, (B, N, 2), dtype=jnp.float32)
    target = jax.random.normal(k2, (B, N, 2), dtype=jnp.float32)

    loss = hungarian_l1_loss(pred, target)
    loss = jax.block_until_ready(loss)

    ref = _ref_loss(np.asarray(pred), np.asarray(target))
    assert np.allclose(np.asarray(loss), ref, rtol=1e-5, atol=1e-5), (loss, ref)
    print("KERNEL_OK")
</pallas_src>

<mosaic_0001>
module attributes {stable_mosaic.version = 11 : i64} {
  func.func @_cost_kernel(%arg0: i32, %arg1: i32, %arg2: i32, %arg3: memref<1x8x2xf32, #tpu.memory_space<vmem>>, %arg4: memref<1x2x128xf32, #tpu.memory_space<vmem>>, %arg5: memref<1x8x128xf32, #tpu.memory_space<vmem>>) attributes {dimension_semantics = [#tpu.dimension_semantics<parallel>, #tpu.dimension_semantics<parallel>, #tpu.dimension_semantics<parallel>], iteration_bounds = array<i64: 2, 1, 1>, scalar_prefetch = 0 : i64, scratch_operands = 0 : i64, tpu.core_type = #tpu.core_type<tc>, window_params = [{transform_indices = @transform_0, window_bounds = array<i64: 1, 8, 2>}, {transform_indices = @transform_1, window_bounds = array<i64: 1, 2, 128>}, {transform_indices = @transform_2, window_bounds = array<i64: 1, 8, 128>}]} {
    %c0 = arith.constant 0 : index
    %c0_0 = arith.constant 0 : index
    %c0_1 = arith.constant 0 : index
    %0 = vector.load %arg3[%c0, %c0_0, %c0_1] : memref<1x8x2xf32, #tpu.memory_space<vmem>>, vector<1x8x2xf32>
    %1 = vector.shape_cast %0 : vector<1x8x2xf32> to vector<8x2xf32>
    %c0_2 = arith.constant 0 : index
    %c0_3 = arith.constant 0 : index
    %c0_4 = arith.constant 0 : index
    %2 = vector.load %arg4[%c0_2, %c0_3, %c0_4] : memref<1x2x128xf32, #tpu.memory_space<vmem>>, vector<1x2x128xf32>
    %3 = vector.shape_cast %2 : vector<1x2x128xf32> to vector<2x128xf32>
    %4 = vector.extract_strided_slice %1 {offsets = [0, 0], sizes = [8, 1], strides = [1, 1]} : vector<8x2xf32> to vector<8x1xf32>
    %5 = vector.extract_strided_slice %1 {offsets = [0, 1], sizes = [8, 1], strides = [1, 1]} : vector<8x2xf32> to vector<8x1xf32>
    %6 = vector.extract_strided_slice %3 {offsets = [0, 0], sizes = [1, 128], strides = [1, 1]} : vector<2x128xf32> to vector<1x128xf32>
    %7 = vector.extract_strided_slice %3 {offsets = [1, 0], sizes = [1, 128], strides = [1, 1]} : vector<2x128xf32> to vector<1x128xf32>
    %8 = vector.broadcast %4 : vector<8x1xf32> to vector<8x128xf32>
    %9 = vector.broadcast %6 : vector<1x128xf32> to vector<8x128xf32>
    %10 = arith.subf %8, %9 : vector<8x128xf32>
    %11 = math.absf %10 : vector<8x128xf32>
    %12 = vector.broadcast %5 : vector<8x1xf32> to vector<8x128xf32>
    %13 = vector.broadcast %7 : vector<1x128xf32> to vector<8x128xf32>
    %14 = arith.subf %12, %13 : vector<8x128xf32>
    %15 = math.absf %14 : vector<8x128xf32>
    %16 = arith.addf %11, %15 : vector<8x128xf32>
    %c0_5 = arith.constant 0 : index
    %c0_6 = arith.constant 0 : index
    %c0_7 = arith.constant 0 : index
    %17 = vector.load %arg5[%c0_5, %c0_6, %c0_7] : memref<1x8x128xf32, #tpu.memory_space<vmem>>, vector<1x8x128xf32>
    %18 = vector.shape_cast %17 : vector<1x8x128xf32> to vector<8x128xf32>
    %19 = vector.shape_cast %16 : vector<8x128xf32> to vector<1x8x128xf32>
    tpu.vector_store %arg5[%c0_5, %c0_6, %c0_7], %19 {strides = array<i32>} : memref<1x8x128xf32, #tpu.memory_space<vmem>>, vector<1x8x128xf32>,
    return
  }
  func.func @transform_0(%arg0: i32, %arg1: i32, %arg2: i32) -> (i32, i32, i32) {
    %c0_i32 = arith.constant 0 : i32
    %c0_i32_0 = arith.constant 0 : i32
    return %arg0, %arg1, %c0_i32 : i32, i32, i32
  }
  func.func @transform_1(%arg0: i32, %arg1: i32, %arg2: i32) -> (i32, i32, i32) {
    %c0_i32 = arith.constant 0 : i32
    %c0_i32_0 = arith.constant 0 : i32
    return %arg0, %c0_i32, %arg2 : i32, i32, i32
  }
  func.func @transform_2(%arg0: i32, %arg1: i32, %arg2: i32) -> (i32, i32, i32) {
    %c0_i32 = arith.constant 0 : i32
    return %arg0, %arg1, %arg2 : i32, i32, i32
  }
}

</mosaic_0001>

<bundles_post_ra>
// kernel: pairwise_l1_cost.1
= control target key start
LH: loop header
LB: loop body
LE: loop exit
PB: predicated region body
PF: predicated region fallthrough
CT: control target
= control target key end

     0   :  { %7 = vsyncpa [#allocation3], 0  ;;  %s601_s0 = inlined_call_operand.vmem [shape: f32[2,8,2], index: 0, kind: input, shape index: {}]   ;;  %s602_s1 = inlined_call_operand.vmem [shape: f32[2,2,128], index: 1, kind: input, shape index: {}]   ;;  %s603_s2 = inlined_call_operand.hbm [shape: f32[2,8,128], index: 2, kind: output, shape index: {}]  }
   0x1   :  { %9 = vsyncpa [#allocation3 + $0x1], 0  ;;  %s499_s9 = smov 0   ;;  %s501_s10 = smov 0  }
   0x2   :  { %s503_s11 = smov 0   ;;  %s505_s12 = smov 0  }
   0x3   :  { %s507_s13 = smov 0   ;;  %s509_s14 = smov 0  }
   0x4 LB: > { %s332_s15 = sadd.s32 4294967295, %s479_s14   ;;  %s333_s16 = sadd.s32 4294967294, %s479_s14   ;;  %s479_s14 = sphi %s509_s14, %s15_s14   ;;  %s475_s13 = sphi %s507_s13, %s610_s13   ;;  %s471_s12 = sphi %s505_s12, %s609_s12   ;;  %s467_s11 = sphi %s503_s11, %s608_s11   ;;  %s463_s10 = sphi %s501_s10, %s607_s10   ;;  %s459_s9 = sphi %s499_s9, %s606_s9  }
   0x5   : > { %s34_s17 = sadd.s32 1, %s475_s13  ;;  %s101_s18 = sadd.s32 1, %s467_s11 }
   0x6   : > { %p36_p0 = scmp.ge.s32.totalorder %s34_s17, 2  ;;  %p111_p1 = scmp.ne.s32.totalorder %s467_s11, %s463_s10 }
   0x7   : > { %p112_p2 = scmp.eq.s32.totalorder %s332_s15, 1  ;;  %p117_p3 = scmp.ne.s32.totalorder %s463_s10, %s459_s9 }
   0x8   : > { %s612_s17 = smov (%p36_p0, %s34_s17), 0  ;;  %p118_p5 = scmp.eq.s32.totalorder %s333_s16, 1 }
   0x9   : > { %p539_p4 = por %p112_p2, %p111_p1  ;;  %s94_s20 = ssub.s32 %s475_s13, %s612_s17 }
   0xa   : > { %p336_p6 = scmp.ge.s32.totalorder %s479_s14, 1  ;;  %p99_p7 = scmp.eq.s32.totalorder %s94_s20, 0 }
   0xb   : > { %p546_p8 = por %p118_p5, %p117_p3  ;;  %p156_p9 = scmp.lt.s32.totalorder %s479_s14, 3 }
   0xc   : > { %s552_s22 = scalar_select %p99_p7, %s467_s11, %s101_s18  }
   0xd   : > { %p157_p10 = pnand %p336_p6, %p156_p9 }
   0xe   : > { %p187_p11 = scmp.lt.s32.totalorder (!%p157_p10), %s471_s12, 1  ;;  %s184_s4 = sand.u32 (!%p157_p10), 1, %s463_s10  }
   0xf   : > { %160 = sbr.rel (%p157_p10) target bundleno = 173 (0xad), region = 28  ;;  %s337_s5 = sshll.u32 (!%p157_p10), %s184_s4, 3 }
  0x10   : > { %s341_s6 = sshll.u32 (!%p157_p10), %s471_s12, 7  ;;  %s186_s7 = scalar_lea.vmem (!%p157_p10), [#allocation2], %s337_s5 }
  0x11   : > { %s242_s8 = sshll.u32 (!%p157_p10), %s186_s7, 4  ;;  %s240_s18 = scalar_lea.hbm (!%p157_p10), %s603_s2, %s341_s6  ;;  %s243_s8 = int_to_ptr.vmem [resolvable:$true] %s242_s8 }
  0x12   : > { %s227_s20 = scalar_lea.sflag (!%p157_p10), [#allocation3], %s184_s4 }
  0x14   : > { %v481_v0 = vmov 0   ;;  %s188_s23 = scalar_select %p187_p11, %s471_s12, 1  ;;  %v482_v2 = vmov 1   ;;  %v208_v3 = vlaneseq }
  0x15   : > { %401 = vset.pattern.permute.xlu0 %v481_v0 }
  0x16   : > { %s338_s24 = sshll.u32 %s188_s23, 3  ;;  %s339_s28 = sshll.u32 %s188_s23, 1  ;;  %v209_v4 = vshrl.u32 %v208_v3, 7 }
  0x17   : > { %s193_s27 = scalar_lea.vmem %s601_s0, %s338_s24  ;;  %s200_s3 = scalar_lea.vmem %s602_s1, %s339_s28 }
  0x18   : > { %v201_v1 = vld [vmem:[%s193_s27] sm:$0xff]  ;;  %v210_v5 = vsub.s32 0, %v209_v4  ;;  %v220_v7 = vsub.s32 1, %v209_v4  ;;  %s403_s23 = scalar_lea.vmem %s243_s8, 128  ;;  %s483_s24 = smov [#allocation2]  }
  0x19   : > { %205 = vperm.xlu0 %401, %v201_v1   ;;  %v202_v6 = vld [vmem:[%s200_s3] sm:$0x3]  ;;  %p404_p12 = scmp.ne.s32.totalorder %s243_s8, %s403_s23  ;;  %s407_s25 = sshll.u32 %s483_s24, 4  ;;  %s408_s25 = int_to_ptr.vmem [resolvable:$false] %s407_s25 }
  0x1a   : > { %v211_v8 = vrot.slane %v202_v6, %v210_v5  ;;  %v221_v10 = vrot.slane %v202_v6, %v220_v7  ;;  %s409_s12 = scalar_lea.vmem %s408_s25, 256  ;;  %p410_p1 = scmp.lt.s32.totalorder %s243_s8, %s408_s25 }
  0x1b   : > { %p405_p13 = pnand %p404_p12, %p539_p4  ;;  %p411_p2 = scmp.lt.s32.totalorder %s409_s12, %s403_s23 }
  0x1d   : > { %402 = vset.pattern.permute.xlu0 %v482_v2  ;;  %p406_p0 = pneg %p405_p13  ;;  %p412_p3 = por %p411_p2, %p410_p1 }
  0x1e   : > { %215 = vperm.xlu0 %402, %v201_v1  }
  0x1f   : > { %p413_p5 = pnand %p412_p3, %p406_p0 }
  0x94   : > { %v206_v9 = vpop.permute.xlu0 %205 }
  0x95   : > { %v212_v11 = vsub.f32 %v206_v9, %v211_v8 }
  0x97   : > { %v213_v14 = vand.u32 2147483647, %v212_v11 }
  0x99   : > { %v216_v12 = vpop.permute.xlu0 %215 }
  0x9a   : > { %v222_v13 = vsub.f32 %v216_v12, %v221_v10 }
  0x9c   : > { %v223_v15 = vand.u32 2147483647, %v222_v13 }
  0x9e   : > { %v224_v16 = vadd.f32 %v223_v15, %v213_v14 }
  0xa0   : > { %225 = vst [vmem:[%s186_s7] sm:$0xff] %v224_v16 }
  0xa1   : > { %416 = shalt.err (!%p413_p5)
}
  0xa2   : > { %s417_s26 = scalar_lea.hbm %s240_s18, 128  ;;  %s421_s29 = scalar_lea.hbm %s603_s2, 256 }
  0xa3   : > { %p418_p6 = scmp.ne.s32.totalorder %s240_s18, %s417_s26  ;;  %p422_p10 = scmp.lt.s32.totalorder %s240_s18, %s603_s2 }
  0xa4   : > { %p423_p11 = scmp.lt.s32.totalorder %s421_s29, %s417_s26 }
  0xa5   : > { %p419_p7 = pnand %p418_p6, %p539_p4 }
  0xa6   : > { %p424_p12 = por %p423_p11, %p422_p10 }
  0xa7   : > { %p420_p9 = pneg %p419_p7 }
  0xa9   : > { %p425_p13 = pnand %p424_p12, %p420_p9 }
  0xab   : > { %428 = shalt.err (!%p425_p13)
}
  0xac   : > { %344 = dma.vmem_to_hbm [thread:$0]  (%p539_p4), %s243_s8, 128, %s240_s18, %s227_s20  }
  0xad PF: > { %p350_p0 = scmp.ge.s32.totalorder %s479_s14, 2  ;;  %s254_s4 = sand.u32 1, %s459_s9  }
  0xae   : > { %s255_s5 = scalar_lea.sflag [#allocation3], %s254_s4 }
  0xaf   : > { %p347_p1 = pnand %p350_p0, %p546_p8 }
  0xb1   : > { %p348_p2 = pneg %p347_p1 }
  0xb3   : > { %454 = dma.done.wait (%p348_p2), %s255_s5, 128  }
  0xb4   : > { %456 = vsyncadd (%p348_p2), %s255_s5, 4294967168  ;;  %s15_s14 = sadd.s32 1, %s479_s14   ;;  %s606_s9 = smov %s463_s10 }
  0xb5   : > { %p12_p3 = scmp.ge.s32.totalorder %s15_s14, 4   ;;  %s607_s10 = smov %s467_s11 }
  0xb6   : > { %s608_s11 = smov %s552_s22  ;;  %s609_s12 = smov %s475_s13 }
  0xb7   : > { %s610_s13 = smov %s612_s17  ;;  %14 = sbr.rel (!%p12_p3) target bundleno = 4 (0x4), region = 66 }
  0xbc   :  { %260 = vsyncpa [#allocation3], 1 }
  0xbd   :  { %262 = vsyncpa [#allocation3 + $0x1], 1 }

</bundles_post_ra>
